<compile_context>
chip_gen: v7x
topology: tpu7x:2x2x1
jax: 0.10.0
libtpu: 0.0.40
codegen_flags: <defaults>
</compile_context>

<pallas_src>
import jax
import jax.numpy as jnp
from jax.experimental import pallas as pl
from jax.experimental.pallas import tpu as pltpu


def _round_up(x, m):
    return ((x + m - 1) // m) * m


def _cdiv(a, b):
    return -(-a // b)


def _vmem_capacity_bytes(default=64 << 20):
    """Trace-time VMEM capacity query with a conservative fallback."""
    try:
        cap = getattr(pltpu.get_tpu_info(), "vmem_capacity_bytes", None)
        if cap:
            return int(cap)
    except Exception:
        pass
    return default


def _conv_bn_relu_kernel(x_ref, w_ref, scale_ref, shift_ref, o_ref):
    # x_ref:     (NB, C_in, TS)   spatial on lanes (lane-dense loads/stores)
    # w_ref:     (C_out, C_in)    conv weight in compute dtype (unscaled)
    # scale_ref: (C_out, 1) f32   BN gamma / sqrt(var + eps)
    # shift_ref: (C_out, 1) f32   BN beta - mean * scale
    # o_ref:     (NB, C_out, TS)
    w = w_ref[...]
    scale = scale_ref[...]
    shift = shift_ref[...]
    for b in range(x_ref.shape[0]):
        # In-kernel downcast to the compute dtype (free VPU op; avoids an extra
        # full-array HBM pass in the wrapper).  No-op when dtypes already match.
        x = x_ref[b].astype(w.dtype)
        y = jnp.dot(w, x, preferred_element_type=jnp.float32)   # MXU, f32 acc
        y = y * scale + shift                                    # f32 epilogue
        o_ref[b] = jnp.maximum(y, 0.0).astype(o_ref.dtype)


def conv_bn_relu(x_nchw, weight, gamma, beta, mean, var, *, eps=1e-5,
                 compute_dtype=None, out_dtype=None, max_spatial_tile=2048):
    """Eval-mode Conv(1x1, bias=False) -> BatchNorm2d -> ReLU, NCHW in/out."""
    N, C_in, H, W = x_nchw.shape
    C_out = weight.shape[0]
    assert weight.shape == (C_out, C_in, 1, 1), "pointwise (1x1) conv expected"

    x_dtype = jnp.dtype(x_nchw.dtype)
    compute_dtype = jnp.dtype(compute_dtype) if compute_dtype is not None else x_dtype
    out_dtype = jnp.dtype(out_dtype) if out_dtype is not None else x_dtype

    # Eval-mode BN affine (f32).  Applied post-matmul in the kernel epilogue so
    # the (possibly bf16) weight stays unscaled -> no amplified rounding when
    # the running variance is tiny.
    scale_vec = (gamma / jnp.sqrt(var + eps)).astype(jnp.float32)     # (C_out,)
    shift_vec = (beta - mean * scale_vec).astype(jnp.float32)         # (C_out,)
    scale = scale_vec.reshape(C_out, 1)
    shift = shift_vec.reshape(C_out, 1)
    w2d = weight.reshape(C_out, C_in).astype(compute_dtype)           # tiny cast

    # ---- Generation-aware tile sizing -------------------------------------
    S = H * W
    x_item = x_dtype.itemsize
    out_item = out_dtype.itemsize
    w_item = compute_dtype.itemsize

    w_bytes = C_out * C_in * w_item
    single_buffer_w = w_bytes >= (256 << 10)   # only matters for large weights

    vmem_cap = _vmem_capacity_bytes()
    tile_budget = vmem_cap // 3                         # ~21 MiB v7x, ~42 MiB v5e/v6e
    vmem_limit = int(min(vmem_cap // 2, 64 << 20))      # 32 MiB v7x, 64 MiB v5e/v6e

    const_bytes = (1 if single_buffer_w else 2) * w_bytes + 4 * C_out * 4

    def tile_bytes(ts_, nb_):
        # double-buffered x tile + out tile + (weight, scale, shift)
        return 2 * nb_ * ts_ * (C_in * x_item + C_out * out_item) + const_bytes

    ts = min(max_spatial_tile, _round_up(S, 256))
    while ts > 256 and tile_bytes(ts, 1) > tile_budget:
        ts //= 2

    # v7x has 2 TensorCores: when N == 1, make sure there are >= 2 grid steps.
    while N == 1 and _cdiv(S, ts) < 2 and ts // 2 >= 256 and S > ts // 2:
        ts //= 2

    s_tiles = _cdiv(S, ts)

    # Small feature maps: block over batch so each grid step moves >=~1024 lanes,
    # while keeping at least 2 parallel grid steps for v7x.
    nb = 1
    if _round_up(S, 256) < 1024 and N > 1:
        want = max(1, 1024 // ts)
        for cand in range(min(N, 8, want), 1, -1):
            if N % cand:
                continue
            if tile_bytes(ts, cand) > tile_budget:
                continue
            if (N // cand) * s_tiles < 2:
                continue
            nb = cand
            break

    # ---- pallas_call --------------------------------------------------------
    # Free reshape (merges contiguous trailing dims); no pad, no dtype cast.
    x_flat = x_nchw.reshape(N, C_in, S)

    w_spec_kwargs = {}
    if single_buffer_w:
        # Constant block index -> fetched once; one VMEM copy is enough.
        w_spec_kwargs["pipeline_mode"] = pl.Buffered(1)

    in_specs = [
        pl.BlockSpec((nb, C_in, ts), lambda n, j: (n, 0, j)),              # x tile
        pl.BlockSpec((C_out, C_in), lambda n, j: (0, 0), **w_spec_kwargs),  # W
        pl.BlockSpec((C_out, 1), lambda n, j: (0, 0)),                      # BN scale
        pl.BlockSpec((C_out, 1), lambda n, j: (0, 0)),                      # BN shift
    ]

    out_flat = pl.pallas_call(
        _conv_bn_relu_kernel,
        out_shape=jax.ShapeDtypeStruct((N, C_out, S), out_dtype),
        grid_spec=pltpu.PrefetchScalarGridSpec(
            num_scalar_prefetch=0,
            grid=(N // nb, s_tiles),
            in_specs=in_specs,
            out_specs=pl.BlockSpec((nb, C_out, ts), lambda n, j: (n, 0, j)),
        ),
        compiler_params=pltpu.CompilerParams(
            dimension_semantics=("parallel", "parallel"),
            vmem_limit_bytes=vmem_limit),
    )(x_flat, w2d, scale, shift)

    # Free reshape back to NCHW; ragged spatial remainder was handled by the
    # masked output stores, so no slicing is needed.
    return out_flat.reshape(N, C_out, H, W)


def _reference_forward(x_nchw, weight, gamma, beta, mean, var, eps=1e-5):
    """Plain-JAX reference: Conv(1x1) -> BN(eval) -> ReLU (Dropout = identity)."""
    C_out, C_in = weight.shape[:2]
    scale = gamma / jnp.sqrt(var + eps)
    w2d = weight.reshape(C_out, C_in)
    y = jnp.einsum("oc,nchw->nohw", w2d, x_nchw)
    y = y * scale.reshape(1, C_out, 1, 1) \
        + (beta - mean * scale).reshape(1, C_out, 1, 1)
    return jnp.maximum(y, 0.0)


if __name__ == "__main__":
    key = jax.random.PRNGKey(0)
    kx, kw, kg, kb, km, kv, kx2 = jax.random.split(key, 7)

    C_in, C_out = 8, 16

    # PyTorch Conv2d(1x1, bias=False) weight layout: (C_out, C_in, 1, 1).
    weight = jax.random.normal(kw, (C_out, C_in, 1, 1), jnp.float32) * 0.1
    # BatchNorm2d (eval) parameters / running stats.
    gamma = 1.0 + 0.1 * jax.random.normal(kg, (C_out,), jnp.float32)
    beta = 0.1 * jax.random.normal(kb, (C_out,), jnp.float32)
    mean = 0.1 * jax.random.normal(km, (C_out,), jnp.float32)
    var = jnp.abs(jax.random.normal(kv, (C_out,), jnp.float32)) + 0.5

    fwd = jax.jit(conv_bn_relu,
                  static_argnames=("eps", "compute_dtype", "out_dtype",
                                   "max_spatial_tile"))

    # 1) f32 path, aligned spatial extent.
    x1 = jax.random.normal(kx, (2, C_in, 16, 16), jnp.float32)
    out1 = jax.block_until_ready(fwd(x1, weight, gamma, beta, mean, var))
    ref1 = _reference_forward(x1, weight, gamma, beta, mean, var)
    assert out1.shape == (2, C_out, 16, 16)
    assert jnp.allclose(out1, ref1, atol=1e-4, rtol=1e-4), "f32 mismatch vs reference"

    # 2) bf16 compute + bf16 output, ragged spatial extent (13*15=195 lanes):
    #    exercises the masked remainder path (no pad/slice in the wrapper) and
    #    the in-kernel downcast.
    x2 = jax.random.normal(kx2, (2, C_in, 13, 15), jnp.float32)
    out2 = jax.block_until_ready(
        fwd(x2, weight, gamma, beta, mean, var,
            compute_dtype=jnp.bfloat16, out_dtype=jnp.bfloat16))
    ref2 = _reference_forward(x2, weight, gamma, beta, mean, var)
    assert out2.shape == (2, C_out, 13, 15)
    assert out2.dtype == jnp.dtype(jnp.bfloat16)
    assert jnp.allclose(out2.astype(jnp.float32), ref2, atol=3e-2, rtol=3e-2), \
        "bf16 mismatch vs reference"

    print("KERNEL_OK")
</pallas_src>

<mosaic_0001>
module attributes {stable_mosaic.version = 11 : i64} {
  func.func @_conv_bn_relu_kernel(%arg0: i32, %arg1: i32, %arg2: memref<1x8x256xf32, #tpu.memory_space<vmem>>, %arg3: memref<16x8xf32, #tpu.memory_space<vmem>>, %arg4: memref<16x1xf32, #tpu.memory_space<vmem>>, %arg5: memref<16x1xf32, #tpu.memory_space<vmem>>, %arg6: memref<1x16x256xf32, #tpu.memory_space<vmem>>) attributes {dimension_semantics = [#tpu.dimension_semantics<parallel>, #tpu.dimension_semantics<parallel>], iteration_bounds = array<i64: 2, 1>, scalar_prefetch = 0 : i64, scratch_operands = 0 : i64, tpu.core_type = #tpu.core_type<tc>, window_params = [{transform_indices = @transform_0, window_bounds = array<i64: 1, 8, 256>}, {pipeline_mode = #tpu.pipeline_mode<synchronous>, transform_indices = @transform_1, window_bounds = array<i64: 16, 8>}, {pipeline_mode = #tpu.pipeline_mode<synchronous>, transform_indices = @transform_2, window_bounds = array<i64: 16, 1>}, {pipeline_mode = #tpu.pipeline_mode<synchronous>, transform_indices = @transform_3, window_bounds = array<i64: 16, 1>}, {transform_indices = @transform_4, window_bounds = array<i64: 1, 16, 256>}]} {
    %c0 = arith.constant 0 : index
    %c0_0 = arith.constant 0 : index
    %0 = vector.load %arg3[%c0, %c0_0] : memref<16x8xf32, #tpu.memory_space<vmem>>, vector<16x8xf32>
    %c0_1 = arith.constant 0 : index
    %c0_2 = arith.constant 0 : index
    %1 = vector.load %arg4[%c0_1, %c0_2] : memref<16x1xf32, #tpu.memory_space<vmem>>, vector<16x1xf32>
    %c0_3 = arith.constant 0 : index
    %c0_4 = arith.constant 0 : index
    %2 = vector.load %arg5[%c0_3, %c0_4] : memref<16x1xf32, #tpu.memory_space<vmem>>, vector<16x1xf32>
    %c0_5 = arith.constant 0 : index
    %c0_6 = arith.constant 0 : index
    %c0_7 = arith.constant 0 : index
    %3 = vector.load %arg2[%c0_5, %c0_6, %c0_7] : memref<1x8x256xf32, #tpu.memory_space<vmem>>, vector<1x8x256xf32>
    %4 = vector.shape_cast %3 : vector<1x8x256xf32> to vector<8x256xf32>
    %cst = arith.constant dense<0.000000e+00> : vector<16x256xf32>
    %5 = tpu.matmul %0, %4, %cst {dimension_numbers = #tpu.dot_dimension_numbers<[1], [0], [0], [1], [0, 0, 1, 1], [], []>} : vector<16x8xf32>, vector<8x256xf32>, vector<16x256xf32> -> vector<16x256xf32>
    %6 = vector.broadcast %1 : vector<16x1xf32> to vector<16x256xf32>
    %7 = arith.mulf %5, %6 : vector<16x256xf32>
    %8 = vector.broadcast %2 : vector<16x1xf32> to vector<16x256xf32>
    %9 = arith.addf %7, %8 : vector<16x256xf32>
    %cst_8 = arith.constant 0.000000e+00 : f32
    %10 = vector.broadcast %cst_8 : f32 to vector<16x256xf32>
    %11 = arith.maximumf %9, %10 : vector<16x256xf32>
    %c0_9 = arith.constant 0 : index
    %c0_10 = arith.constant 0 : index
    %c0_11 = arith.constant 0 : index
    %12 = vector.load %arg6[%c0_9, %c0_10, %c0_11] : memref<1x16x256xf32, #tpu.memory_space<vmem>>, vector<1x16x256xf32>
    %13 = vector.shape_cast %12 : vector<1x16x256xf32> to vector<16x256xf32>
    %14 = vector.shape_cast %11 : vector<16x256xf32> to vector<1x16x256xf32>
    tpu.vector_store %arg6[%c0_9, %c0_10, %c0_11], %14 {strides = array<i32>} : memref<1x16x256xf32, #tpu.memory_space<vmem>>, vector<1x16x256xf32>,
    return
  }
  func.func @transform_0(%arg0: i32, %arg1: i32) -> (i32, i32, i32) {
    %c0_i32 = arith.constant 0 : i32
    %c0_i32_0 = arith.constant 0 : i32
    return %arg0, %c0_i32, %arg1 : i32, i32, i32
  }
  func.func @transform_1(%arg0: i32, %arg1: i32) -> (i32, i32) {
    %c0_i32 = arith.constant 0 : i32
    %c0_i32_0 = arith.constant 0 : i32
    %c0_i32_1 = arith.constant 0 : i32
    return %c0_i32, %c0_i32_0 : i32, i32
  }
  func.func @transform_2(%arg0: i32, %arg1: i32) -> (i32, i32) {
    %c0_i32 = arith.constant 0 : i32
    %c0_i32_0 = arith.constant 0 : i32
    %c0_i32_1 = arith.constant 0 : i32
    return %c0_i32, %c0_i32_0 : i32, i32
  }
  func.func @transform_3(%arg0: i32, %arg1: i32) -> (i32, i32) {
    %c0_i32 = arith.constant 0 : i32
    %c0_i32_0 = arith.constant 0 : i32
    %c0_i32_1 = arith.constant 0 : i32
    return %c0_i32, %c0_i32_0 : i32, i32
  }
  func.func @transform_4(%arg0: i32, %arg1: i32) -> (i32, i32, i32) {
    %c0_i32 = arith.constant 0 : i32
    %c0_i32_0 = arith.constant 0 : i32
    return %arg0, %c0_i32, %arg1 : i32, i32, i32
  }
}

</mosaic_0001>

<bundles_post_ra>
// kernel: conv_bn_relu.1
= control target key start
LH: loop header
LB: loop body
LE: loop exit
PB: predicated region body
PF: predicated region fallthrough
CT: control target
= control target key end

     0   :  { %s548_s15 = smov 0   ;;  %s550_s16 = smov 0   ;;  %s603_s0 = inlined_call_operand.vmem [shape: f32[2,8,256], index: 0, kind: input, shape index: {}]   ;;  %s604_s1 = inlined_call_operand.vmem [shape: f32[16,8], index: 1, kind: input, shape index: {}]   ;;  %s605_s2 = inlined_call_operand.vmem [shape: f32[16,1], index: 2, kind: input, shape index: {}]   ;;  %s606_s3 = inlined_call_operand.vmem [shape: f32[16,1], index: 3, kind: input, shape index: {}]   ;;  %s607_s4 = inlined_call_operand.vmem [shape: f32[2,16,256], index: 4, kind: output, shape index: {}]  }
   0x1   :  { %s552_s17 = smov 0  }
   0x2 LB: > { %s26_s18 = sadd.s32 1, %s515_s16  ;;  %p456_p0 = scmp.ge.s32.totalorder %s519_s17, 1  ;;  %s519_s17 = sphi %s552_s17, %s14_s17   ;;  %s515_s16 = sphi %s550_s16, %s609_s16   ;;  %s511_s15 = sphi %s548_s15, %s608_s15  }
   0x3   : > { %p28_p1 = scmp.ge.s32.totalorder %s26_s18, 2  ;;  %p183_p2 = scmp.lt.s32.totalorder %s519_s17, 3 }
   0x5   : > { %s611_s18 = smov (%p28_p1, %s26_s18), 0  ;;  %p184_p3 = pnand %p456_p0, %p183_p2 }
   0x6   : > { %p218_p4 = scmp.lt.s32.totalorder (!%p184_p3), %s511_s15, 1  ;;  %v521_v0 = vmov (!%p184_p3), 0.0   ;;  %v239_v1 = vld [vmem:[%s605_s2] sm:$0xff] (!%p184_p3)  ;;  %v522_v3 = vmov (!%p184_p3), 0   ;;  %vm245_vm0 = vcmask (!%p184_p3), 64512   ;;  %v238_v7 = vld [vmem:[%s604_s1 + $0x8] sm:$0xff] (!%p184_p3) }
   0x7   : > { %187 = sbr.rel (%p184_p3) target bundleno = 240 (0xf0), region = 36  ;;  %316 = vmatprep.mubr.f32.mxu0 (!%p184_p3), %v521_v0  ;;  %322 = vmatprep.mubr.f32.mxu1 (!%p184_p3), %v521_v0  ;;  %v241_v2 = vld [vmem:[%s606_s3] sm:$0xff] (!%p184_p3)  ;;  %v240_v8 = vld [vmem:[%s605_s2 + $0x8] sm:$0xff] (!%p184_p3) }
   0x8   : > { %495 = vset.pattern.permute.xlu0 (!%p184_p3), %v522_v3  ;;  %496 = vset.pattern.permute.xlu1 (!%p184_p3), %v522_v3  ;;  %v237_v4 = vld [vmem:[%s604_s1] sm:$0xff] (!%p184_p3)  ;;  %v242_v9 = vld [vmem:[%s606_s3 + $0x8] sm:$0xff] (!%p184_p3) }
   0x9   : > { %331 = vperm.xlu0 (!%p184_p3), %495, %v239_v1   ;;  %345 = vperm.xlu1 (!%p184_p3), %496, %v241_v2  }
   0xd   : > { %336 = vperm.xlu0 (!%p184_p3), %495, %v240_v8   ;;  %350 = vperm.xlu1 (!%p184_p3), %496, %v242_v9  }
   0xe   : > { %s613_s15 = smov (!%p218_p4, %s511_s15), 1 }
   0xf   : > { %s465_s23 = sshll.u32 %s613_s15, 4  ;;  %s466_s9 = sshll.u32 %s613_s15, 5 }
  0x10   : > { %s225_s26 = scalar_lea.vmem %s603_s0, %s465_s23  ;;  %s235_s12 = scalar_lea.vmem %s607_s4, %s466_s9 }
  0x11   : > { %v244_v5 = vld [vmem:[%s225_s26 + $0x8] sm:$0xff]  ;;  %v243_v6 = vld [vmem:[%s225_s26] sm:$0xff] }
  0x12   : > { %252 = vmatprep.subr.mxu0 %v244_v5  ;;  %467 = vmatprep.subr.mxu1 %v244_v5 }
  0x13   : > { %253 = vmatpush1.msra.mxu0 %v243_v6  ;;  %468 = vmatpush1.msra.mxu1 %v243_v6 }
  0x14   : > { %461 = vmatmul.mubr.msk.f32.vlgmr.msra.gmra.mrb[0].mxu0 %vm245_vm0, %v237_v4  ;;  %462 = vmatmul.mubr.msk.f32.vlgmr.msra.gmra.mrb[0].mxu1 %vm245_vm0, %v238_v7 }
  0x88   : > { %v332_v10 = vpop.permute.xlu0 %331  ;;  %v346_v11 = vpop.permute.xlu1 %345 }
  0x8c   : > { %v337_v12 = vpop.permute.xlu0 %336  ;;  %v351_v19 = vpop.permute.xlu1 %350 }
  0xe7   : > { %v318_v13 = vpop.f32.mrb[0].mxu0  ;;  %v324_v14 = vpop.f32.mrb[0].mxu1 }
  0xe8   : > { %v339_v15 = vmul.f32 %v332_v10, %v318_v13  ;;  %v341_v16 = vmul.f32 %v337_v12, %v324_v14  ;;  %v320_v17 = vpop.f32.mrb[1].mxu0  ;;  %v326_v18 = vpop.f32.mrb[1].mxu1 }
  0xe9   : > { %v340_v20 = vmul.f32 %v332_v10, %v320_v17  ;;  %v342_v21 = vmul.f32 %v337_v12, %v326_v18 }
  0xea   : > { %v353_v22 = vadd.f32 %v346_v11, %v339_v15  ;;  %v355_v23 = vadd.f32 %v351_v19, %v341_v16 }
  0xeb   : > { %v354_v24 = vadd.f32 %v346_v11, %v340_v20  ;;  %v356_v25 = vadd.f32 %v351_v19, %v342_v21 }
  0xec   : > { %v357_v26 = vmax.f32 %v353_v22, 0.0  ;;  %v359_v27 = vmax.f32 %v355_v23, 0.0 }
  0xed   : > { %v358_v28 = vmax.f32 %v354_v24, 0.0  ;;  %v360_v29 = vmax.f32 %v356_v25, 0.0 }
  0xee   : > { %361 = vst [vmem:[%s235_s12] sm:$0xff] %v357_v26  ;;  %363 = vst [vmem:[%s235_s12 + $0x10] sm:$0xff] %v359_v27 }
  0xef   : > { %362 = vst [vmem:[%s235_s12 + $0x8] sm:$0xff] %v358_v28  ;;  %364 = vst [vmem:[%s235_s12 + $0x18] sm:$0xff] %v360_v29 }
  0xf0 PF: > { %s14_s17 = sadd.s32 1, %s519_s17   ;;  %s608_s15 = smov %s515_s16 }
  0xf1   : > { %p11_p5 = scmp.ge.s32.totalorder %s14_s17, 4   ;;  %s609_s16 = smov %s611_s18 }
  0xf3   :  { %13 = sbr.rel (!%p11_p5) target bundleno = 2 (0x2), region = 66 }

</bundles_post_ra>
